<compile_context>
chip_gen: v6e
topology: v6e:2x2x1
jax: 0.10.0
libtpu: 0.0.40
codegen_flags: <defaults>
</compile_context>

<pallas_src>
import functools

import jax
import jax.numpy as jnp
from jax.experimental import pallas as pl
from jax.experimental.pallas import tpu as pltpu


def _sparsemax_kernel(x_ref, o_ref, *, chunk):
    """Sparsemax over the last (D) axis of a (TM, D) tile.

    The tile is processed in `chunk`-row slices.  Each slice is flipped
    in-kernel to a (D, chunk) compute layout (independent rows on the lane
    axis, the D-wide sparsemax axis on the sublane axis) so every vreg is
    lane-dense and all reductions/broadcasts stay on the sublane axis.

    Rank formulation (identical to the sort/cumsum reference, ties included):
        m_i    = sum_j max(z_j, z_i)
        supp_i = [m_i - D*z_i < 1]        # == [1 + k_i*z_i > S_i]
        k*     = sum_i supp_i             # >= 1 always (the row argmax), so no
        tau    = (sum_i supp_i*z_i - 1)/k*    # div-by-zero even on garbage rows
        out_i  = max(0, z_i - tau)
    All math is row-local, so the ragged last grid block (garbage rows that are
    never written back) cannot contaminate valid rows.
    """
    tm, d = x_ref.shape

    def process(start, width):
        xs = x_ref[pl.ds(start, width), :]                  # (width, D)
        if xs.dtype != jnp.float32:
            xs = xs.astype(jnp.float32)
        z = jnp.transpose(xs)                               # (D, width), XLU flip
        z = z - jnp.max(z, axis=0, keepdims=True)           # sublane reduce
        # Single-accumulator rank loop: 2 VALU ops / element / j, Python-unrolled.
        m = jnp.zeros_like(z)
        for j in range(d):
            m = m + jnp.maximum(z[j:j + 1, :], z)           # sublane bcast of row j
        supp = (m - float(d) * z) < 1.0                     # strict <  (keeps ties exact)
        kstar = jnp.sum(jnp.where(supp, 1.0, 0.0), axis=0, keepdims=True)
        ssum = jnp.sum(jnp.where(supp, z, 0.0), axis=0, keepdims=True)
        tau = (ssum - 1.0) / kstar
        out = jnp.maximum(z - tau, 0.0)                     # (D, width)
        o_ref[pl.ds(start, width), :] = jnp.transpose(out).astype(o_ref.dtype)

    # TODO(synk): for large D (>= ~128) an in-kernel sort+cumsum formulation is
    # asymptotically cheaper than this O(D^2) rank loop; unnecessary for D=16.
    num_full = tm // chunk
    rem = tm - num_full * chunk
    if num_full == 1:
        process(0, chunk)
    elif num_full > 1:
        @pl.loop(0, num_full)
        def _(c):
            process(pl.multiple_of(c * chunk, chunk), chunk)
    if rem:
        process(num_full * chunk, rem)


def _choose_tiling(n, d, itemsize, target_block_bytes=2 << 20):
    """Pick (tm, chunk): rows per grid step and rows per in-kernel slice."""
    # Compute layout is (D, chunk); ~3 live (D, chunk) f32 arrays must fit the
    # 64 x 4 KiB vreg file.  chunk = 1024 for D = 16.
    chunk_cap = max(128, ((48 * 1024) // (3 * max(1, d))) // 128 * 128)
    chunk = min(1024, chunk_cap)
    if n <= 256:
        return n, n                        # one block, one (possibly ragged) chunk
    row_bytes = max(1, d * itemsize)
    # ~2 MiB per (TM, D) DMA buffer; in+out double-buffered ~8 MiB total, well
    # inside every generation's VMEM including v7x's 64 MiB.
    tm = max(chunk, (target_block_bytes // row_bytes) // chunk * chunk)
    steps = max(2, pl.cdiv(n, tm))
    if steps % 2:                          # even step count -> balanced split
        steps += 1                         # across v7x's two TensorCores
    tm = max(8, pl.cdiv(pl.cdiv(n, steps), 8) * 8)   # sublane-aligned rows
    return tm, min(chunk, tm)


def sparsemax_pallas(x, dim=-1):
    """Sparsemax along `dim` (default -1); hot loop runs in a Pallas TPU kernel."""
    ndim = x.ndim
    dim = dim % ndim

    # Glue: move the sparsemax axis last and flatten the rest into rows.  No
    # materialized HBM transposes: for dim == -1 (the TabNet case) both
    # moveaxis calls are no-ops and the reshape is a bitcast, so HBM traffic is
    # exactly one read + one write of the tensor (the kernel's own DMAs).
    xm = jnp.moveaxis(x, dim, -1)
    moved_shape = xm.shape
    d = moved_shape[-1]
    x2 = xm.reshape(-1, d)                                  # (rows, D), contiguous
    n = x2.shape[0]

    tm, chunk = _choose_tiling(n, d, jnp.dtype(x.dtype).itemsize)
    grid0 = pl.cdiv(n, tm)

    out2 = pl.pallas_call(
        functools.partial(_sparsemax_kernel, chunk=chunk),
        out_shape=jax.ShapeDtypeStruct((n, d), x.dtype),
        grid_spec=pltpu.PrefetchScalarGridSpec(
            num_scalar_prefetch=0,
            grid=(grid0,),
            in_specs=[pl.BlockSpec((tm, d), lambda i: (i, 0))],
            out_specs=pl.BlockSpec((tm, d), lambda i: (i, 0)),
        ),
        compiler_params=pltpu.CompilerParams(
            dimension_semantics=("parallel",),
            vmem_limit_bytes=32 * 1024 * 1024,
        ),
    )(x2)

    out = out2.reshape(moved_shape)
    return jnp.moveaxis(out, -1, dim)


def sparsemax_ref(x, dim=-1):
    """Pure-JAX reference mirroring the PyTorch sort/cumsum formulation."""
    z = jnp.moveaxis(x, dim, -1).astype(jnp.float32)
    z = z - jnp.max(z, axis=-1, keepdims=True)
    zs = -jnp.sort(-z, axis=-1)                             # descending sort
    d = z.shape[-1]
    rng = jnp.arange(1, d + 1, dtype=z.dtype)
    bound = 1.0 + rng * zs
    cum = jnp.cumsum(zs, axis=-1)
    is_gt = (bound > cum).astype(z.dtype)
    k = jnp.max(is_gt * rng, axis=-1, keepdims=True)
    taus = (jnp.sum(is_gt * zs, axis=-1, keepdims=True) - 1.0) / k
    out = jnp.maximum(z - taus, 0.0)
    return jnp.moveaxis(out, -1, dim).astype(x.dtype)


if __name__ == "__main__":
    sparsemax = jax.jit(sparsemax_pallas, static_argnames=("dim",))

    key = jax.random.PRNGKey(0)
    k1, k2 = jax.random.split(key)

    # (batch=2, channels=4, spatial=16x16); sparsemax over dim=-1 (D=16).
    x1 = jax.random.normal(k1, (2, 4, 16, 16), dtype=jnp.float32)
    out1 = jax.block_until_ready(sparsemax(x1, dim=-1))
    ref1 = sparsemax_ref(x1, dim=-1)
    assert out1.shape == x1.shape and out1.dtype == x1.dtype
    assert jnp.allclose(out1, ref1, atol=1e-5, rtol=1e-5)
    assert jnp.allclose(jnp.sum(out1, axis=-1), 1.0, atol=1e-4)

    # Larger row count: exercises the multi-block grid (even step count for
    # v7x megacore balance), the ragged last block (no host-side pad) and the
    # in-kernel transpose/compute path on a non-128-multiple chunk.
    x2 = jax.random.normal(k2, (3, 520, 16), dtype=jnp.float32)
    out2 = jax.block_until_ready(sparsemax(x2, dim=-1))
    ref2 = sparsemax_ref(x2, dim=-1)
    assert out2.shape == x2.shape and out2.dtype == x2.dtype
    assert jnp.allclose(out2, ref2, atol=1e-5, rtol=1e-5)
    assert jnp.allclose(jnp.sum(out2, axis=-1), 1.0, atol=1e-4)

    print("KERNEL_OK")
</pallas_src>

<mosaic_0001>
module attributes {stable_mosaic.version = 11 : i64} {
  func.func @_sparsemax_kernel(%arg0: i32, %arg1: memref<128x16xf32, #tpu.memory_space<vmem>>, %arg2: memref<128x16xf32, #tpu.memory_space<vmem>>) attributes {dimension_semantics = [#tpu.dimension_semantics<parallel>], iteration_bounds = array<i64: 1>, scalar_prefetch = 0 : i64, scratch_operands = 0 : i64, tpu.core_type = #tpu.core_type<tc>, window_params = [{transform_indices = @transform_0, window_bounds = array<i64: 128, 16>}, {transform_indices = @transform_1, window_bounds = array<i64: 128, 16>}]} {
    %c0 = arith.constant 0 : index
    %c0_0 = arith.constant 0 : index
    %0 = vector.load %arg1[%c0, %c0_0] : memref<128x16xf32, #tpu.memory_space<vmem>>, vector<128x16xf32>
    %1 = tpu.transpose %0, [1, 0] : vector<128x16xf32> -> vector<16x128xf32>
    %cst = arith.constant dense<0xFF800000> : vector<128xf32>
    %2 = vector.multi_reduction <maximumf>, %1, %cst [0] : vector<16x128xf32> to vector<128xf32>
    %3 = vector.shape_cast %2 : vector<128xf32> to vector<1x128xf32>
    %4 = vector.broadcast %3 : vector<1x128xf32> to vector<16x128xf32>
    %5 = arith.subf %1, %4 : vector<16x128xf32>
    %cst_1 = arith.constant 0.000000e+00 : f32
    %6 = vector.broadcast %cst_1 : f32 to vector<16x128xf32>
    %7 = vector.extract_strided_slice %5 {offsets = [0, 0], sizes = [1, 128], strides = [1, 1]} : vector<16x128xf32> to vector<1x128xf32>
    %8 = vector.broadcast %7 : vector<1x128xf32> to vector<16x128xf32>
    %9 = arith.maximumf %8, %5 : vector<16x128xf32>
    %10 = arith.addf %6, %9 : vector<16x128xf32>
    %11 = vector.extract_strided_slice %5 {offsets = [1, 0], sizes = [1, 128], strides = [1, 1]} : vector<16x128xf32> to vector<1x128xf32>
    %12 = vector.broadcast %11 : vector<1x128xf32> to vector<16x128xf32>
    %13 = arith.maximumf %12, %5 : vector<16x128xf32>
    %14 = arith.addf %10, %13 : vector<16x128xf32>
    %15 = vector.extract_strided_slice %5 {offsets = [2, 0], sizes = [1, 128], strides = [1, 1]} : vector<16x128xf32> to vector<1x128xf32>
    %16 = vector.broadcast %15 : vector<1x128xf32> to vector<16x128xf32>
    %17 = arith.maximumf %16, %5 : vector<16x128xf32>
    %18 = arith.addf %14, %17 : vector<16x128xf32>
    %19 = vector.extract_strided_slice %5 {offsets = [3, 0], sizes = [1, 128], strides = [1, 1]} : vector<16x128xf32> to vector<1x128xf32>
    %20 = vector.broadcast %19 : vector<1x128xf32> to vector<16x128xf32>
    %21 = arith.maximumf %20, %5 : vector<16x128xf32>
    %22 = arith.addf %18, %21 : vector<16x128xf32>
    %23 = vector.extract_strided_slice %5 {offsets = [4, 0], sizes = [1, 128], strides = [1, 1]} : vector<16x128xf32> to vector<1x128xf32>
    %24 = vector.broadcast %23 : vector<1x128xf32> to vector<16x128xf32>
    %25 = arith.maximumf %24, %5 : vector<16x128xf32>
    %26 = arith.addf %22, %25 : vector<16x128xf32>
    %27 = vector.extract_strided_slice %5 {offsets = [5, 0], sizes = [1, 128], strides = [1, 1]} : vector<16x128xf32> to vector<1x128xf32>
    %28 = vector.broadcast %27 : vector<1x128xf32> to vector<16x128xf32>
    %29 = arith.maximumf %28, %5 : vector<16x128xf32>
    %30 = arith.addf %26, %29 : vector<16x128xf32>
    %31 = vector.extract_strided_slice %5 {offsets = [6, 0], sizes = [1, 128], strides = [1, 1]} : vector<16x128xf32> to vector<1x128xf32>
    %32 = vector.broadcast %31 : vector<1x128xf32> to vector<16x128xf32>
    %33 = arith.maximumf %32, %5 : vector<16x128xf32>
    %34 = arith.addf %30, %33 : vector<16x128xf32>
    %35 = vector.extract_strided_slice %5 {offsets = [7, 0], sizes = [1, 128], strides = [1, 1]} : vector<16x128xf32> to vector<1x128xf32>
    %36 = vector.broadcast %35 : vector<1x128xf32> to vector<16x128xf32>
    %37 = arith.maximumf %36, %5 : vector<16x128xf32>
    %38 = arith.addf %34, %37 : vector<16x128xf32>
    %39 = vector.extract_strided_slice %5 {offsets = [8, 0], sizes = [1, 128], strides = [1, 1]} : vector<16x128xf32> to vector<1x128xf32>
    %40 = vector.broadcast %39 : vector<1x128xf32> to vector<16x128xf32>
    %41 = arith.maximumf %40, %5 : vector<16x128xf32>
    %42 = arith.addf %38, %41 : vector<16x128xf32>
    %43 = vector.extract_strided_slice %5 {offsets = [9, 0], sizes = [1, 128], strides = [1, 1]} : vector<16x128xf32> to vector<1x128xf32>
    %44 = vector.broadcast %43 : vector<1x128xf32> to vector<16x128xf32>
    %45 = arith.maximumf %44, %5 : vector<16x128xf32>
    %46 = arith.addf %42, %45 : vector<16x128xf32>
    %47 = vector.extract_strided_slice %5 {offsets = [10, 0], sizes = [1, 128], strides = [1, 1]} : vector<16x128xf32> to vector<1x128xf32>
    %48 = vector.broadcast %47 : vector<1x128xf32> to vector<16x128xf32>
    %49 = arith.maximumf %48, %5 : vector<16x128xf32>
    %50 = arith.addf %46, %49 : vector<16x128xf32>
    %51 = vector.extract_strided_slice %5 {offsets = [11, 0], sizes = [1, 128], strides = [1, 1]} : vector<16x128xf32> to vector<1x128xf32>
    %52 = vector.broadcast %51 : vector<1x128xf32> to vector<16x128xf32>
    %53 = arith.maximumf %52, %5 : vector<16x128xf32>
    %54 = arith.addf %50, %53 : vector<16x128xf32>
    %55 = vector.extract_strided_slice %5 {offsets = [12, 0], sizes = [1, 128], strides = [1, 1]} : vector<16x128xf32> to vector<1x128xf32>
    %56 = vector.broadcast %55 : vector<1x128xf32> to vector<16x128xf32>
    %57 = arith.maximumf %56, %5 : vector<16x128xf32>
    %58 = arith.addf %54, %57 : vector<16x128xf32>
    %59 = vector.extract_strided_slice %5 {offsets = [13, 0], sizes = [1, 128], strides = [1, 1]} : vector<16x128xf32> to vector<1x128xf32>
    %60 = vector.broadcast %59 : vector<1x128xf32> to vector<16x128xf32>
    %61 = arith.maximumf %60, %5 : vector<16x128xf32>
    %62 = arith.addf %58, %61 : vector<16x128xf32>
    %63 = vector.extract_strided_slice %5 {offsets = [14, 0], sizes = [1, 128], strides = [1, 1]} : vector<16x128xf32> to vector<1x128xf32>
    %64 = vector.broadcast %63 : vector<1x128xf32> to vector<16x128xf32>
    %65 = arith.maximumf %64, %5 : vector<16x128xf32>
    %66 = arith.addf %62, %65 : vector<16x128xf32>
    %67 = vector.extract_strided_slice %5 {offsets = [15, 0], sizes = [1, 128], strides = [1, 1]} : vector<16x128xf32> to vector<1x128xf32>
    %68 = vector.broadcast %67 : vector<1x128xf32> to vector<16x128xf32>
    %69 = arith.maximumf %68, %5 : vector<16x128xf32>
    %70 = arith.addf %66, %69 : vector<16x128xf32>
    %cst_2 = arith.constant 1.600000e+01 : f32
    %71 = vector.broadcast %cst_2 : f32 to vector<16x128xf32>
    %72 = arith.mulf %71, %5 : vector<16x128xf32>
    %73 = arith.subf %70, %72 : vector<16x128xf32>
    %cst_3 = arith.constant 1.000000e+00 : f32
    %74 = vector.broadcast %cst_3 : f32 to vector<16x128xf32>
    %75 = arith.cmpf olt, %73, %74 : vector<16x128xf32>
    %cst_4 = arith.constant 1.000000e+00 : f32
    %cst_5 = arith.constant 0.000000e+00 : f32
    %76 = vector.broadcast %cst_4 : f32 to vector<16x128xf32>
    %77 = vector.broadcast %cst_5 : f32 to vector<16x128xf32>
    %78 = arith.select %75, %76, %77 : vector<16x128xi1>, vector<16x128xf32>
    %cst_6 = arith.constant dense<0.000000e+00> : vector<128xf32>
    %79 = vector.multi_reduction <add>, %78, %cst_6 [0] : vector<16x128xf32> to vector<128xf32>
    %80 = vector.shape_cast %79 : vector<128xf32> to vector<1x128xf32>
    %cst_7 = arith.constant 0.000000e+00 : f32
    %81 = vector.broadcast %cst_7 : f32 to vector<16x128xf32>
    %82 = arith.select %75, %5, %81 : vector<16x128xi1>, vector<16x128xf32>
    %cst_8 = arith.constant dense<0.000000e+00> : vector<128xf32>
    %83 = vector.multi_reduction <add>, %82, %cst_8 [0] : vector<16x128xf32> to vector<128xf32>
    %84 = vector.shape_cast %83 : vector<128xf32> to vector<1x128xf32>
    %cst_9 = arith.constant 1.000000e+00 : f32
    %85 = vector.broadcast %cst_9 : f32 to vector<1x128xf32>
    %86 = arith.subf %84, %85 : vector<1x128xf32>
    %87 = arith.divf %86, %80 : vector<1x128xf32>
    %88 = vector.broadcast %87 : vector<1x128xf32> to vector<16x128xf32>
    %89 = arith.subf %5, %88 : vector<16x128xf32>
    %cst_10 = arith.constant 0.000000e+00 : f32
    %90 = vector.broadcast %cst_10 : f32 to vector<16x128xf32>
    %91 = arith.maximumf %89, %90 : vector<16x128xf32>
    %92 = tpu.transpose %91, [1, 0] : vector<16x128xf32> -> vector<128x16xf32>
    %c0_11 = arith.constant 0 : index
    %c0_12 = arith.constant 0 : index
    %93 = vector.load %arg2[%c0_11, %c0_12] : memref<128x16xf32, #tpu.memory_space<vmem>>, vector<128x16xf32>
    tpu.vector_store %arg2[%c0_11, %c0_12], %92 {strides = array<i32>} : memref<128x16xf32, #tpu.memory_space<vmem>>, vector<128x16xf32>,
    return
  }
  func.func @transform_0(%arg0: i32) -> (i32, i32) {
    %c0_i32 = arith.constant 0 : i32
    %c0_i32_0 = arith.constant 0 : i32
    return %arg0, %c0_i32 : i32, i32
  }
  func.func @transform_1(%arg0: i32) -> (i32, i32) {
    %c0_i32 = arith.constant 0 : i32
    %c0_i32_0 = arith.constant 0 : i32
    return %arg0, %c0_i32 : i32, i32
  }
}

</mosaic_0001>

<bundles_post_ra>
// kernel: sparsemax_pallas.1
= control target key start
LH: loop header
LB: loop body
LE: loop exit
PB: predicated region body
PF: predicated region fallthrough
CT: control target
= control target key end

     0   :  { %6 = vsyncpa [#allocation3], 0  ;;  %s468_s0 = inlined_call_operand.hbm [shape: f32[128,16], index: 0, kind: input, shape index: {}]   ;;  %s469_s1 = inlined_call_operand.hbm [shape: f32[128,16], index: 1, kind: output, shape index: {}]  }
   0x1   :  { %7 = vsyncpa [#allocation4], 0  ;;  %s357_s6 = smov [#allocation2]  }
   0x2   :  { %s13_s7 = sshll.u32 %s357_s6, 4  ;;  %s14_s7 = int_to_ptr.vmem [resolvable:$true] %s13_s7 }
   0x3   :  { %s321_s8 = scalar_lea.vmem %s14_s7, 2048  ;;  %p326_p1 = scmp.lt.s32.totalorder %s14_s7, %s14_s7 }
   0x4   :  { %p322_p0 = scmp.ne.s32.totalorder %s14_s7, %s321_s8  ;;  %p327_p2 = scmp.lt.s32.totalorder %s321_s8, %s321_s8 }
   0x6   :  { %p328_p3 = por %p327_p2, %p326_p1 }
   0x8   :  { %p329_p4 = pnand %p328_p3, %p322_p0 }
   0xa   :  { %332 = shalt.err (!%p329_p4)
}
   0xb   :  { %s358_s9 = smov 128   ;;  %s359_s10 = smov 8  }
   0xc   :  { %19 = dma.hbm_to_vmem [thread:$0]  %s468_s0, 2048, %s14_s7, [#allocation3], %s358_s9, %s358_s9, %s359_s10  }
   0xd   :  { %353 = dma.done.wait [#allocation3], 2048  }
   0xe   :  { %354 = vsyncadd [#allocation3], 4294965248  ;;  %v23_v0 = vld [vmem:[#allocation2] sm:$0xff]  ;;  %v24_v1 = vld [vmem:[#allocation2 + $0x8] sm:$0xff]  ;;  %v80_v21 = vlaneseq  ;;  %vm271_vm2 = vcmask 130048   ;;  %s361_s0 = smov [#allocation5]  }
   0xf   :  { %39 = vxpose.xlu0.b32.start [1/16] (narrow) %v23_v0, 16  ;;  %v25_v2 = vld [vmem:[#allocation2 + $0x10] sm:$0xff]  ;;  %v26_v3 = vld [vmem:[#allocation2 + $0x18] sm:$0xff]  ;;  %v27_v4 = vld [vmem:[#allocation2 + $0x20] sm:$0xff]  ;;  %s293_s13 = sshll.u32 %s361_s0, 4  ;;  %s294_s13 = int_to_ptr.vmem [resolvable:$true] %s293_s13 }
  0x10   :  { %v28_v5 = vld [vmem:[#allocation2 + $0x28] sm:$0xff]  ;;  %v29_v6 = vld [vmem:[#allocation2 + $0x30] sm:$0xff]  ;;  %v30_v7 = vld [vmem:[#allocation2 + $0x38] sm:$0xff]  ;;  %v378_v24 = vshrl.u32 %v80_v21, 7  ;;  %s333_s14 = scalar_lea.vmem %s294_s13, 2048  ;;  %p338_p6 = scmp.lt.s32.totalorder %s294_s13, %s294_s13 }
  0x11   :  { %v31_v8 = vld [vmem:[#allocation2 + $0x40] sm:$0xff]  ;;  %v32_v9 = vld [vmem:[#allocation2 + $0x48] sm:$0xff]  ;;  %v33_v10 = vld [vmem:[#allocation2 + $0x50] sm:$0xff]  ;;  %p334_p5 = scmp.ne.s32.totalorder %s294_s13, %s333_s14  ;;  %p339_p7 = scmp.lt.s32.totalorder %s333_s14, %s333_s14 }
  0x12   :  { %v34_v11 = vld [vmem:[#allocation2 + $0x58] sm:$0xff]  ;;  %v35_v12 = vld [vmem:[#allocation2 + $0x60] sm:$0xff]  ;;  %v36_v13 = vld [vmem:[#allocation2 + $0x68] sm:$0xff]  ;;  %v82_v27 = vsub.s32 0, %v378_v24  ;;  %v90_v28 = vsub.s32 1, %v378_v24  ;;  %v98_v29 = vsub.s32 2, %v378_v24 }
  0x13   :  { %40 = vxpose.xlu0.b32.cont [2/16] (narrow) %v24_v1, 16  ;;  %v37_v14 = vld [vmem:[#allocation2 + $0x70] sm:$0xff]  ;;  %v38_v15 = vld [vmem:[#allocation2 + $0x78] sm:$0xff]  ;;  %v106_v30 = vsub.s32 3, %v378_v24  ;;  %v114_v32 = vsub.s32 4, %v378_v24  ;;  %v122_v38 = vsub.s32 5, %v378_v24  ;;  %p340_p8 = por %p339_p7, %p338_p6 }
  0x14   :  { %v130_v44 = vsub.s32 6, %v378_v24  ;;  %v138_v50 = vsub.s32 7, %v378_v24 }
  0x15   :  { %p341_p9 = pnand %p340_p8, %p334_p5 }
  0x17   :  { %41 = vxpose.xlu0.b32.cont [3/16] (narrow) %v25_v2, 16 }
  0x1b   :  { %42 = vxpose.xlu0.b32.cont [4/16] (narrow) %v26_v3, 16 }
  0x1f   :  { %43 = vxpose.xlu0.b32.cont [5/16] (narrow) %v27_v4, 16 }
  0x23   :  { %44 = vxpose.xlu0.b32.cont [6/16] (narrow) %v28_v5, 16 }
  0x27   :  { %45 = vxpose.xlu0.b32.cont [7/16] (narrow) %v29_v6, 16 }
  0x2b   :  { %46 = vxpose.xlu0.b32.cont [8/16] (narrow) %v30_v7, 16 }
  0x2f   :  { %47 = vxpose.xlu0.b32.cont [9/16] (narrow) %v31_v8, 16 }
  0x33   :  { %48 = vxpose.xlu0.b32.cont [10/16] (narrow) %v32_v9, 16 }
  0x37   :  { %49 = vxpose.xlu0.b32.cont [11/16] (narrow) %v33_v10, 16 }
  0x3b   :  { %50 = vxpose.xlu0.b32.cont [12/16] (narrow) %v34_v11, 16 }
  0x3f   :  { %51 = vxpose.xlu0.b32.cont [13/16] (narrow) %v35_v12, 16 }
  0x43   :  { %52 = vxpose.xlu0.b32.cont [14/16] (narrow) %v36_v13, 16 }
  0x47   :  { %53 = vxpose.xlu0.b32.cont [15/16] (narrow) %v37_v14, 16 }
  0x4b   :  { %54 = vxpose.xlu0.b32.end [16/16] (narrow) %v38_v15, 16 }
  0x8b   :  { %v55_v16 = vpop.trf.xlu0 }
  0x8f   :  { %v56_v17 = vpop.trf.xlu0 }
  0x90   :  { %v71_v18 = vmax.f32 %v55_v16, %v56_v17 }
  0x92   :  { %v72_v19 = vrot.slane %v71_v18, 4 }
  0x94   :  { %v73_v20 = vmax.f32 %v71_v18, %v72_v19 }
  0x96   :  { %v74_v22 = vrot.slane %v73_v20, 2 }
  0x98   :  { %v75_v23 = vmax.f32 %v73_v20, %v74_v22 }
  0x9a   :  { %v76_v25 = vrot.slane %v75_v23, 1 }
  0x9c   :  { %v77_v26 = vmax.f32 %v75_v23, %v76_v25 }
  0x9e   :  { %v384_v31 = vsub.f32 %v55_v16, %v77_v26  ;;  %v387_v33 = vsub.f32 %v56_v17, %v77_v26 }
  0xa0   :  { %v83_v34 = vrot.slane %v384_v31, %v82_v27  ;;  %v91_v35 = vrot.slane %v384_v31, %v90_v28  ;;  %v99_v36 = vrot.slane %v384_v31, %v98_v29  ;;  %v107_v37 = vrot.slane %v384_v31, %v106_v30 }
  0xa1   :  { %v115_v43 = vrot.slane %v384_v31, %v114_v32  ;;  %v123_v49 = vrot.slane %v384_v31, %v122_v38  ;;  %v131_v55 = vrot.slane %v384_v31, %v130_v44  ;;  %v139_v60 = vrot.slane %v384_v31, %v138_v50 }
  0xa2   :  { %v84_v39 = vmax.f32 %v83_v34, %v384_v31  ;;  %v85_v40 = vmax.f32 %v83_v34, %v387_v33  ;;  %v92_v41 = vmax.f32 %v91_v35, %v384_v31  ;;  %v93_v42 = vmax.f32 %v91_v35, %v387_v33 }
  0xa3   :  { %v100_v47 = vmax.f32 %v99_v36, %v384_v31  ;;  %v101_v48 = vmax.f32 %v99_v36, %v387_v33  ;;  %v108_v53 = vmax.f32 %v107_v37, %v384_v31  ;;  %v109_v54 = vmax.f32 %v107_v37, %v387_v33 }
  0xa4   :  { %v94_v45 = vadd.f32 %v92_v41, %v84_v39  ;;  %v95_v46 = vadd.f32 %v93_v42, %v85_v40  ;;  %v116_v58 = vmax.f32 %v115_v43, %v384_v31  ;;  %v117_v59 = vmax.f32 %v115_v43, %v387_v33 }
  0xa5   :  { %v124_v63 = vmax.f32 %v123_v49, %v384_v31  ;;  %v125_v0 = vmax.f32 %v123_v49, %v387_v33  ;;  %v132_v1 = vmax.f32 %v131_v55, %v384_v31  ;;  %v133_v4 = vmax.f32 %v131_v55, %v387_v33 }
  0xa6   :  { %v102_v51 = vadd.f32 %v100_v47, %v94_v45  ;;  %v103_v52 = vadd.f32 %v101_v48, %v95_v46  ;;  %v147_v5 = vrot.slane %v387_v33, %v82_v27  ;;  %v140_v6 = vmax.f32 %v139_v60, %v384_v31 }
  0xa7   :  { %v141_v9 = vmax.f32 %v139_v60, %v387_v33  ;;  %v155_v10 = vrot.slane %v387_v33, %v90_v28  ;;  %v163_v11 = vrot.slane %v387_v33, %v98_v29  ;;  %v171_v16 = vrot.slane %v387_v33, %v106_v30 }
  0xa8   :  { %v110_v56 = vadd.f32 %v108_v53, %v102_v51  ;;  %v111_v57 = vadd.f32 %v109_v54, %v103_v52  ;;  %v148_v14 = vmax.f32 %v147_v5, %v384_v31  ;;  %v149_v15 = vmax.f32 %v147_v5, %v387_v33 }
  0xa9   :  { %v156_v19 = vmax.f32 %v155_v10, %v384_v31  ;;  %v157_v20 = vmax.f32 %v155_v10, %v387_v33  ;;  %v179_v21 = vrot.slane %v387_v33, %v114_v32  ;;  %v164_v24 = vmax.f32 %v163_v11, %v384_v31 }
  0xaa   :  { %v118_v61 = vadd.f32 %v116_v58, %v110_v56  ;;  %v119_v62 = vadd.f32 %v117_v59, %v111_v57  ;;  %v165_v25 = vmax.f32 %v163_v11, %v387_v33  ;;  %v187_v26 = vrot.slane %v387_v33, %v122_v38 }
  0xab   :  { %v172_v29 = vmax.f32 %v171_v16, %v384_v31  ;;  %v173_v30 = vmax.f32 %v171_v16, %v387_v33  ;;  %v180_v34 = vmax.f32 %v179_v21, %v384_v31  ;;  %v181_v32 = vmax.f32 %v179_v21, %v387_v33 }
  0xac   :  { %v126_v2 = vadd.f32 %v124_v63, %v118_v61  ;;  %v127_v3 = vadd.f32 %v125_v0, %v119_v62  ;;  %v195_v37 = vrot.slane %v387_v33, %v130_v44  ;;  %v188_v39 = vmax.f32 %v187_v26, %v384_v31 }
  0xad   :  { %v189_v38 = vmax.f32 %v187_v26, %v387_v33  ;;  %v203_v42 = vrot.slane %v387_v33, %v138_v50  ;;  %v208_v54 = vmul.f32 16.0, %v384_v31  ;;  %v209_v55 = vmul.f32 16.0, %v387_v33 }
  0xae   :  { %v134_v7 = vadd.f32 %v132_v1, %v126_v2  ;;  %v135_v8 = vadd.f32 %v133_v4, %v127_v3  ;;  %v196_v46 = vmax.f32 %v195_v37, %v384_v31  ;;  %v197_v47 = vmax.f32 %v195_v37, %v387_v33 }
  0xaf   :  { %v204_v51 = vmax.f32 %v203_v42, %v384_v31  ;;  %v205_v44 = vmax.f32 %v203_v42, %v387_v33  ;;  %v360_v57 = vmov 0.0  }
  0xb0   :  { %v142_v12 = vadd.f32 %v140_v6, %v134_v7  ;;  %v143_v13 = vadd.f32 %v141_v9, %v135_v8 }
  0xb2   :  { %v150_v17 = vadd.f32 %v148_v14, %v142_v12  ;;  %v151_v18 = vadd.f32 %v149_v15, %v143_v13 }
  0xb4   :  { %v158_v22 = vadd.f32 %v156_v19, %v150_v17  ;;  %v159_v23 = vadd.f32 %v157_v20, %v151_v18 }
  0xb6   :  { %v166_v27 = vadd.f32 %v164_v24, %v158_v22  ;;  %v167_v28 = vadd.f32 %v165_v25, %v159_v23 }
  0xb8   :  { %v174_v35 = vadd.f32 %v172_v29, %v166_v27  ;;  %v175_v36 = vadd.f32 %v173_v30, %v167_v28 }
  0xba   :  { %v182_v40 = vadd.f32 %v180_v34, %v174_v35  ;;  %v183_v41 = vadd.f32 %v181_v32, %v175_v36 }
  0xbc   :  { %v190_v43 = vadd.f32 %v188_v39, %v182_v40  ;;  %v191_v45 = vadd.f32 %v189_v38, %v183_v41 }
  0xbe   :  { %v198_v48 = vadd.f32 %v196_v46, %v190_v43  ;;  %v199_v49 = vadd.f32 %v197_v47, %v191_v45 }
  0xc0   :  { %v206_v52 = vadd.f32 %v204_v51, %v198_v48  ;;  %v207_v53 = vadd.f32 %v205_v44, %v199_v49 }
  0xc2   :  { %v210_v56 = vsub.f32 %v206_v52, %v208_v54  ;;  %v211_v50 = vsub.f32 %v207_v53, %v209_v55 }
  0xc4   :  { %vm212_vm0 = vcmp.lt.f32.partialorder %v210_v56, 1.0  ;;  %vm213_vm1 = vcmp.lt.f32.partialorder %v211_v50, 1.0 }
  0xc5   :  { %v214_v58 = vsel %vm212_vm0, 1.0, %v360_v57  ;;  %v215_v59 = vsel %vm213_vm1, 1.0, %v360_v57  ;;  %v223_v60 = vsel %vm212_vm0, %v384_v31, 0.0  ;;  %v224_v61 = vsel %vm213_vm1, %v387_v33, 0.0 }
  0xc6   :  { %v216_v62 = vadd.f32 %v215_v59, %v214_v58  ;;  %v225_v63 = vadd.f32 %v224_v61, %v223_v60 }
  0xc8   :  { %v217_v0 = vrot.slane %v216_v62, 4  ;;  %v226_v1 = vrot.slane %v225_v63, 4 }
  0xca   :  { %v218_v2 = vadd.f32 %v217_v0, %v216_v62  ;;  %v227_v4 = vadd.f32 %v226_v1, %v225_v63 }
  0xcc   :  { %v219_v3 = vrot.slane %v218_v2, 2  ;;  %v228_v7 = vrot.slane %v227_v4, 2 }
  0xce   :  { %v220_v5 = vadd.f32 %v219_v3, %v218_v2  ;;  %v229_v9 = vadd.f32 %v228_v7, %v227_v4 }
  0xd0   :  { %v221_v6 = vrot.slane %v220_v5, 1  ;;  %v230_v10 = vrot.slane %v229_v9, 1 }
  0xd2   :  { %v222_v8 = vadd.f32 %v221_v6, %v220_v5  ;;  %v231_v11 = vadd.f32 %v230_v10, %v229_v9 }
  0xd4   :  { %311 = vrcp.f32 %v222_v8  ;;  %v305_v12 = vadd.f32 -1.0, %v231_v11 }
  0xe1   :  { %v312_v13 = vpop.eup %311 }
  0xe2   :  { %v234_v14 = vmul.f32 %v312_v13, %v305_v12 }
  0xe4   :  { %v235_v15 = vsub.f32 %v384_v31, %v234_v14  ;;  %v236_v17 = vsub.f32 %v387_v33, %v234_v14 }
  0xe6   :  { %v237_v16 = vmax.f32 %v235_v15, 0.0  ;;  %v238_v18 = vmax.f32 %v236_v17, 0.0 }
  0xe8   :  { %239 = vxpose.xlu1.b32.start [1/2] (short) %v237_v16, 128 }
  0xec   :  { %240 = vxpose.xlu1.b32.end [2/2] (short) %v238_v18, 128 }
 0x164   :  { %v255_v19 = vpop.trf.xlu1 }
 0x165   :  { %272 = vst.msk [vmem:[#allocation5] sm:$0xff] %vm271_vm2, %v255_v19 }
 0x168   :  { %v256_v20 = vpop.trf.xlu1 }
 0x169   :  { %273 = vst.msk [vmem:[#allocation5 + $0x8] sm:$0xff] %vm271_vm2, %v256_v20 }
 0x16c   :  { %v257_v21 = vpop.trf.xlu1 }
 0x16d   :  { %274 = vst.msk [vmem:[#allocation5 + $0x10] sm:$0xff] %vm271_vm2, %v257_v21 }
 0x170   :  { %v258_v22 = vpop.trf.xlu1 }
 0x171   :  { %275 = vst.msk [vmem:[#allocation5 + $0x18] sm:$0xff] %vm271_vm2, %v258_v22 }
 0x174   :  { %v259_v31 = vpop.trf.xlu1 }
 0x175   :  { %276 = vst.msk [vmem:[#allocation5 + $0x20] sm:$0xff] %vm271_vm2, %v259_v31 }
 0x178   :  { %v260_v33 = vpop.trf.xlu1 }
 0x179   :  { %277 = vst.msk [vmem:[#allocation5 + $0x28] sm:$0xff] %vm271_vm2, %v260_v33 }
 0x17c   :  { %v261_v23 = vpop.trf.xlu1 }
 0x17d   :  { %278 = vst.msk [vmem:[#allocation5 + $0x30] sm:$0xff] %vm271_vm2, %v261_v23 }
 0x180   :  { %v262_v24 = vpop.trf.xlu1 }
 0x181   :  { %279 = vst.msk [vmem:[#allocation5 + $0x38] sm:$0xff] %vm271_vm2, %v262_v24 }
 0x184   :  { %v263_v25 = vpop.trf.xlu1 }
 0x185   :  { %280 = vst.msk [vmem:[#allocation5 + $0x40] sm:$0xff] %vm271_vm2, %v263_v25 }
 0x188   :  { %v264_v26 = vpop.trf.xlu1 }
 0x189   :  { %281 = vst.msk [vmem:[#allocation5 + $0x48] sm:$0xff] %vm271_vm2, %v264_v26 }
 0x18c   :  { %v265_v27 = vpop.trf.xlu1 }
 0x18d   :  { %282 = vst.msk [vmem:[#allocation5 + $0x50] sm:$0xff] %vm271_vm2, %v265_v27 }
 0x190   :  { %v266_v28 = vpop.trf.xlu1 }
 0x191   :  { %283 = vst.msk [vmem:[#allocation5 + $0x58] sm:$0xff] %vm271_vm2, %v266_v28 }
 0x194   :  { %v267_v29 = vpop.trf.xlu1 }
 0x195   :  { %284 = vst.msk [vmem:[#allocation5 + $0x60] sm:$0xff] %vm271_vm2, %v267_v29 }
 0x198   :  { %v268_v30 = vpop.trf.xlu1 }
 0x199   :  { %285 = vst.msk [vmem:[#allocation5 + $0x68] sm:$0xff] %vm271_vm2, %v268_v30 }
 0x19c   :  { %v269_v34 = vpop.trf.xlu1 }
 0x19d   :  { %286 = vst.msk [vmem:[#allocation5 + $0x70] sm:$0xff] %vm271_vm2, %v269_v34 }
 0x1a0   :  { %v270_v35 = vpop.trf.xlu1 }
 0x1a1   :  { %287 = vst.msk [vmem:[#allocation5 + $0x78] sm:$0xff] %vm271_vm2, %v270_v35 }
 0x1a2   :  { %344 = shalt.err (!%p341_p9)
}
 0x1a3   :  { %299 = dma.vmem_to_hbm [thread:$0]  %s294_s13, 2048, %s469_s1, [#allocation4], %s358_s9, %s358_s9, %s359_s10  }
 0x1a4   :  { %355 = dma.done.wait [#allocation4], 2048  }
 0x1a5   :  { %356 = vsyncadd [#allocation4], 4294965248 }
 0x1a6   :  { %303 = vsyncpa [#allocation3], 1 }
 0x1a7   :  { %304 = vsyncpa [#allocation4], 1 }

</bundles_post_ra>
